<compile_context>
chip_gen: v6e
topology: v6e:2x2x1
jax: 0.10.0
libtpu: 0.0.40
codegen_flags: <defaults>
</compile_context>

<pallas_src>
import functools

import jax
import jax.numpy as jnp
from jax.experimental import pallas as pl
from jax.experimental.pallas import tpu as pltpu


LANE = 128          # lane-dense width for all hidden layers / head / output
N_HIDDEN = 4        # fc1..fc4


def dueling_q_kernel(x_ref, w_ref, out_ref, *, n_actions, s_aug, inv_count):
    # x_ref:   (B, s_aug) bf16  = [state | 1 | zero-pad]
    # w_ref:   (N_HIDDEN+1, P, P) bf16, biases folded in (ones-lane trick)
    # out_ref: (B, P) f32, q in lanes 0..A-1 (advantage-first head layout)

    # fc1: (B, s_aug) @ (s_aug, P).  Row `state_size` of w carries b1 and
    # w[state_size, P-1] = 1 recreates the ones lane in the fc1 output.
    h = jnp.maximum(
        jnp.dot(x_ref[...], w_ref[0, :s_aug, :],
                preferred_element_type=jnp.float32),
        0.0).astype(jnp.bfloat16)

    # fc2..fc4: uniform (B, P) @ (P, P); bias in row P-1, w[P-1, P-1] = 1 so
    # the ones lane survives ReLU (relu(1) = 1).
    for i in range(1, N_HIDDEN):
        h = jnp.maximum(
            jnp.dot(h, w_ref[i], preferred_element_type=jnp.float32),
            0.0).astype(jnp.bfloat16)

    # Fused V/AL head (one matmul): lanes 0..A-1 = advantages, lane A = value.
    heads = jnp.dot(h, w_ref[N_HIDDEN], preferred_element_type=jnp.float32)
    af = heads[:, 0:n_actions]                       # (B, A), output-aligned
    value = heads[:, n_actions:n_actions + 1]        # (B, 1)

    # torch.mean(af): mean over ALL elements (batch AND action dims).
    af_mean = jnp.sum(af) * inv_count

    # Full-width (unmasked) store; lanes >= A are don't-care, wrapper slices.
    out_ref[...] = value + (heads - af_mean)


def pack_dueling_params(params, state_size, pad_dim=LANE):
    """params: [(W (in,out) f32, b (out,) f32)] * 6, ordered
    [fc1, fc2, fc3, fc4, V, AL].

    Returns (w_pack bf16 (5, P, P), s_aug) with biases folded in:
      * activation lane P-1 carries a constant 1 (the "ones lane"),
      * each layer's bias is stored in that layer's ones-row of the weight,
      * hidden layers set w[ones_row, P-1] = 1 so the ones lane propagates.
    Zero padding elsewhere keeps everything numerically exact.
    """
    n_layers = N_HIDDEN + 1           # 4 hidden + fused head
    P = pad_dim
    BIAS = P - 1                      # ones lane / bias row for layers 2..head

    w_pack = jnp.zeros((n_layers, P, P), jnp.float32)

    # fc1: input is [state | 1 | zero-pad] of width s_aug (16-multiple for
    # clean bf16 sublane tiling); bias row = state_size.
    s_aug = ((state_size + 1 + 15) // 16) * 16
    assert s_aug <= P
    w1, b1 = params[0]
    out1 = w1.shape[1]
    assert out1 < BIAS
    w_pack = w_pack.at[0, :state_size, :out1].set(w1)
    w_pack = w_pack.at[0, state_size, :out1].set(b1)
    w_pack = w_pack.at[0, state_size, BIAS].set(1.0)   # re-emit ones lane

    # fc2..fc4
    for i in range(1, N_HIDDEN):
        w, b = params[i]
        fin, fout = w.shape
        assert fout < BIAS
        w_pack = w_pack.at[i, :fin, :fout].set(w)
        w_pack = w_pack.at[i, BIAS, :fout].set(b)
        w_pack = w_pack.at[i, BIAS, BIAS].set(1.0)      # keep ones lane alive

    # Fused head, advantage-first: cols 0..A-1 = AL, col A = V.
    (wv, bv), (wa, ba) = params[4], params[5]
    fin = wv.shape[0]
    n_actions = wa.shape[1]
    assert n_actions + 1 <= BIAS
    w_pack = w_pack.at[4, :fin, :n_actions].set(wa)
    w_pack = w_pack.at[4, :fin, n_actions:n_actions + 1].set(wv)
    w_pack = w_pack.at[4, BIAS, :n_actions].set(ba)
    w_pack = w_pack.at[4, BIAS, n_actions].set(bv[0])

    return w_pack.astype(jnp.bfloat16), s_aug


def dueling_q_forward(state, w_pack, n_actions, state_size, s_aug):
    B = state.shape[0]
    P = w_pack.shape[1]

    # Augment state with the constant-1 bias lane (tiny: B x s_aug bf16,
    # not a full B x 128 pad).  Extra lanes hit zero weight rows -> exact.
    x = jnp.zeros((B, s_aug), jnp.bfloat16)
    x = x.at[:, :state_size].set(state.astype(jnp.bfloat16))
    x = x.at[:, state_size].set(1.0)

    kernel = functools.partial(
        dueling_q_kernel,
        n_actions=n_actions,
        s_aug=s_aug,
        inv_count=1.0 / float(B * n_actions),
    )

    cost = pl.CostEstimate(
        flops=2 * B * P * (s_aug + N_HIDDEN * P),
        transcendentals=0,
        bytes_accessed=int(w_pack.size) * 2 + int(x.size) * 2 + B * P * 4,
    )

    vmem = pl.BlockSpec(memory_space=pltpu.MemorySpace.VMEM)
    q_full = pl.pallas_call(
        kernel,
        out_shape=jax.ShapeDtypeStruct((B, P), jnp.float32),
        in_specs=[vmem, vmem],
        out_specs=vmem,
        cost_estimate=cost,
    )(x, w_pack)

    return q_full[:, :n_actions]


def xavier_uniform(key, fan_in, fan_out):
    bound = jnp.sqrt(6.0 / (fan_in + fan_out))
    # PyTorch (out, in) layout; transposed below for the kernel.
    return jax.random.uniform(key, (fan_out, fan_in), jnp.float32, -bound, bound)


def linear_bias(key, fan_in, fan_out):
    # PyTorch nn.Linear default bias init: U(-1/sqrt(fan_in), 1/sqrt(fan_in))
    bound = 1.0 / jnp.sqrt(jnp.float32(fan_in))
    return jax.random.uniform(key, (fan_out,), jnp.float32, -bound, bound)


def make_params(key, layer_dims):
    """layer_dims: list of (in, out) for [fc1, fc2, fc3, fc4, V, AL]."""
    params = []
    for fan_in, fan_out in layer_dims:
        key, kw, kb = jax.random.split(key, 3)
        w = xavier_uniform(kw, fan_in, fan_out)      # (out, in)
        b = linear_bias(kb, fan_in, fan_out)         # (out,)
        params.append((w.T, b))                      # kernel layout: (in, out)
    return params


def reference_forward(state, params):
    """Pure-JAX reference mirroring the kernel's bf16-weights/inputs with f32
    accumulation (biases also stored in bf16, matching the packed slab)."""
    h = state
    for w, b in params[:4]:
        y = jnp.dot(h.astype(jnp.bfloat16), w.astype(jnp.bfloat16),
                    preferred_element_type=jnp.float32) + b.astype(jnp.bfloat16)
        h = jnp.maximum(y, 0.0)
    hv = h.astype(jnp.bfloat16)
    value = jnp.dot(hv, params[4][0].astype(jnp.bfloat16),
                    preferred_element_type=jnp.float32) + params[4][1].astype(jnp.bfloat16)
    af = jnp.dot(hv, params[5][0].astype(jnp.bfloat16),
                 preferred_element_type=jnp.float32) + params[5][1].astype(jnp.bfloat16)
    return value + (af - jnp.mean(af))


if __name__ == "__main__":
    # Network spec mirroring the PyTorch module's params dict:
    #   l1=(16,64), l2=(64,64), l3=(64,64), l4=(64,64), l5=(64, n_actions)
    state_size, h1, h2, h3, h4, n_actions = 16, 64, 64, 64, 64, 8
    batch = 32   # small demo; production callers should batch >= 128-256/call

    key = jax.random.PRNGKey(0)
    key, kx, kp = jax.random.split(key, 3)

    layer_dims = [
        (state_size, h1),   # fc1
        (h1, h2),           # fc2
        (h2, h3),           # fc3
        (h3, h4),           # fc4
        (h4, 1),            # V
        (h4, n_actions),    # AL
    ]
    params = make_params(kp, layer_dims)
    w_pack, s_aug = pack_dueling_params(params, state_size, LANE)

    state = jax.random.normal(kx, (batch, state_size), jnp.float32)

    q = dueling_q_forward(state, w_pack, n_actions, state_size, s_aug)
    q = jax.block_until_ready(q)

    q_ref = reference_forward(state, params)
    assert q.shape == (batch, n_actions)
    assert jnp.allclose(q, q_ref, atol=2e-3, rtol=2e-3), "mismatch vs JAX reference"

    print("KERNEL_OK")
</pallas_src>

<mosaic_0001>
module attributes {stable_mosaic.version = 11 : i64} {
  func.func @dueling_q_kernel(%arg0: memref<32x32xbf16, #tpu.memory_space<vmem>>, %arg1: memref<5x128x128xbf16, #tpu.memory_space<vmem>>, %arg2: memref<32x128xf32, #tpu.memory_space<vmem>>) attributes {dimension_semantics = [], scalar_prefetch = 0 : i64, scratch_operands = 0 : i64, tpu.core_type = #tpu.core_type<tc>} {
    %c0 = arith.constant 0 : index
    %c0_0 = arith.constant 0 : index
    %0 = vector.load %arg0[%c0, %c0_0] : memref<32x32xbf16, #tpu.memory_space<vmem>>, vector<32x32xbf16>
    %c0_1 = arith.constant 0 : index
    %c0_2 = arith.constant 0 : index
    %c0_3 = arith.constant 0 : index
    %1 = vector.load %arg1[%c0_1, %c0_2, %c0_3] : memref<5x128x128xbf16, #tpu.memory_space<vmem>>, vector<1x32x128xbf16>
    %2 = vector.shape_cast %1 : vector<1x32x128xbf16> to vector<32x128xbf16>
    %cst = arith.constant dense<0.000000e+00> : vector<32x128xf32>
    %3 = tpu.matmul %0, %2, %cst {dimension_numbers = #tpu.dot_dimension_numbers<[1], [0], [0], [1], [0, 0, 1, 1], [], []>} : vector<32x32xbf16>, vector<32x128xbf16>, vector<32x128xf32> -> vector<32x128xf32>
    %cst_4 = arith.constant 0.000000e+00 : f32
    %4 = vector.broadcast %cst_4 : f32 to vector<32x128xf32>
    %5 = arith.maximumf %3, %4 : vector<32x128xf32>
    %6 = arith.truncf %5 : vector<32x128xf32> to vector<32x128xbf16>
    %c1 = arith.constant 1 : index
    %c0_5 = arith.constant 0 : index
    %c0_6 = arith.constant 0 : index
    %7 = vector.load %arg1[%c1, %c0_5, %c0_6] : memref<5x128x128xbf16, #tpu.memory_space<vmem>>, vector<1x128x128xbf16>
    %8 = vector.shape_cast %7 : vector<1x128x128xbf16> to vector<128x128xbf16>
    %cst_7 = arith.constant dense<0.000000e+00> : vector<32x128xf32>
    %9 = tpu.matmul %6, %8, %cst_7 {dimension_numbers = #tpu.dot_dimension_numbers<[1], [0], [0], [1], [0, 0, 1, 1], [], []>} : vector<32x128xbf16>, vector<128x128xbf16>, vector<32x128xf32> -> vector<32x128xf32>
    %cst_8 = arith.constant 0.000000e+00 : f32
    %10 = vector.broadcast %cst_8 : f32 to vector<32x128xf32>
    %11 = arith.maximumf %9, %10 : vector<32x128xf32>
    %12 = arith.truncf %11 : vector<32x128xf32> to vector<32x128xbf16>
    %c2 = arith.constant 2 : index
    %c0_9 = arith.constant 0 : index
    %c0_10 = arith.constant 0 : index
    %13 = vector.load %arg1[%c2, %c0_9, %c0_10] : memref<5x128x128xbf16, #tpu.memory_space<vmem>>, vector<1x128x128xbf16>
    %14 = vector.shape_cast %13 : vector<1x128x128xbf16> to vector<128x128xbf16>
    %cst_11 = arith.constant dense<0.000000e+00> : vector<32x128xf32>
    %15 = tpu.matmul %12, %14, %cst_11 {dimension_numbers = #tpu.dot_dimension_numbers<[1], [0], [0], [1], [0, 0, 1, 1], [], []>} : vector<32x128xbf16>, vector<128x128xbf16>, vector<32x128xf32> -> vector<32x128xf32>
    %cst_12 = arith.constant 0.000000e+00 : f32
    %16 = vector.broadcast %cst_12 : f32 to vector<32x128xf32>
    %17 = arith.maximumf %15, %16 : vector<32x128xf32>
    %18 = arith.truncf %17 : vector<32x128xf32> to vector<32x128xbf16>
    %c3 = arith.constant 3 : index
    %c0_13 = arith.constant 0 : index
    %c0_14 = arith.constant 0 : index
    %19 = vector.load %arg1[%c3, %c0_13, %c0_14] : memref<5x128x128xbf16, #tpu.memory_space<vmem>>, vector<1x128x128xbf16>
    %20 = vector.shape_cast %19 : vector<1x128x128xbf16> to vector<128x128xbf16>
    %cst_15 = arith.constant dense<0.000000e+00> : vector<32x128xf32>
    %21 = tpu.matmul %18, %20, %cst_15 {dimension_numbers = #tpu.dot_dimension_numbers<[1], [0], [0], [1], [0, 0, 1, 1], [], []>} : vector<32x128xbf16>, vector<128x128xbf16>, vector<32x128xf32> -> vector<32x128xf32>
    %cst_16 = arith.constant 0.000000e+00 : f32
    %22 = vector.broadcast %cst_16 : f32 to vector<32x128xf32>
    %23 = arith.maximumf %21, %22 : vector<32x128xf32>
    %24 = arith.truncf %23 : vector<32x128xf32> to vector<32x128xbf16>
    %c4 = arith.constant 4 : index
    %c0_17 = arith.constant 0 : index
    %c0_18 = arith.constant 0 : index
    %25 = vector.load %arg1[%c4, %c0_17, %c0_18] : memref<5x128x128xbf16, #tpu.memory_space<vmem>>, vector<1x128x128xbf16>
    %26 = vector.shape_cast %25 : vector<1x128x128xbf16> to vector<128x128xbf16>
    %cst_19 = arith.constant dense<0.000000e+00> : vector<32x128xf32>
    %27 = tpu.matmul %24, %26, %cst_19 {dimension_numbers = #tpu.dot_dimension_numbers<[1], [0], [0], [1], [0, 0, 1, 1], [], []>} : vector<32x128xbf16>, vector<128x128xbf16>, vector<32x128xf32> -> vector<32x128xf32>
    %28 = vector.extract_strided_slice %27 {offsets = [0, 0], sizes = [32, 8], strides = [1, 1]} : vector<32x128xf32> to vector<32x8xf32>
    %29 = vector.extract_strided_slice %27 {offsets = [0, 8], sizes = [32, 1], strides = [1, 1]} : vector<32x128xf32> to vector<32x1xf32>
    %30 = vector.shape_cast %28 : vector<32x8xf32> to vector<1x32x8xf32>
    %cst_20 = arith.constant dense<0.000000e+00> : vector<1xf32>
    %31 = vector.multi_reduction <add>, %30, %cst_20 [1, 2] : vector<1x32x8xf32> to vector<1xf32>
    %32 = vector.shape_cast %31 : vector<1xf32> to vector<1x1x1xf32>
    %33 = vector.extract %32[0, 0, 0] : f32 from vector<1x1x1xf32>
    %cst_21 = arith.constant 3.906250e-03 : f32
    %34 = arith.mulf %33, %cst_21 : f32
    %35 = vector.broadcast %34 : f32 to vector<32x128xf32>
    %36 = arith.subf %27, %35 : vector<32x128xf32>
    %37 = vector.broadcast %29 : vector<32x1xf32> to vector<32x128xf32>
    %38 = arith.addf %37, %36 : vector<32x128xf32>
    %c0_22 = arith.constant 0 : index
    %c0_23 = arith.constant 0 : index
    %39 = vector.load %arg2[%c0_22, %c0_23] : memref<32x128xf32, #tpu.memory_space<vmem>>, vector<32x128xf32>
    tpu.vector_store %arg2[%c0_22, %c0_23], %38 {strides = array<i32>} : memref<32x128xf32, #tpu.memory_space<vmem>>, vector<32x128xf32>,
    return
  }
}

</mosaic_0001>

<bundles_post_ra>
// kernel: tpu_custom_call.1
= control target key start
LH: loop header
LB: loop body
LE: loop exit
PB: predicated region body
PF: predicated region fallthrough
CT: control target
= control target key end

     0   :  { %7 = vsyncpa [#allocation3], 0  ;;  %s992_s0 = inlined_call_operand.hbm [shape: bf16[32,32], index: 0, kind: input, shape index: {}]   ;;  %s993_s1 = inlined_call_operand.hbm [shape: bf16[5,128,128], index: 1, kind: input, shape index: {}]   ;;  %s994_s2 = inlined_call_operand.hbm [shape: f32[32,128], index: 2, kind: output, shape index: {}]  }
   0x1   :  { %8 = vsyncpa [#allocation6], 0 }
   0x2   :  { %9 = vsyncpa [#allocation4], 0  ;;  %s960_s9 = smov [#allocation2]  }
   0x3   :  { %s15_s10 = sshll.u32 %s960_s9, 4  ;;  %s16_s10 = int_to_ptr.vmem [resolvable:$true] %s15_s10 }
   0x4   :  { %s902_s11 = scalar_lea.vmem %s16_s10, 256  ;;  %p907_p1 = scmp.lt.s32.totalorder %s16_s10, %s16_s10 }
   0x5   :  { %p903_p0 = scmp.ne.s32.totalorder %s16_s10, %s902_s11  ;;  %p908_p2 = scmp.lt.s32.totalorder %s902_s11, %s902_s11 }
   0x7   :  { %p909_p3 = por %p908_p2, %p907_p1 }
   0x9   :  { %p910_p4 = pnand %p909_p3, %p903_p0 }
   0xb   :  { %913 = shalt.err (!%p910_p4)
}
   0xc   :  { %s961_s12 = smov 64   ;;  %s962_s13 = smov 4  }
   0xd   :  { %21 = dma.hbm_to_vmem [thread:$0]  %s992_s0, 256, %s16_s10, [#allocation3], %s961_s12, %s961_s12, %s962_s13  }
   0xe   :  { %s963_s16 = smov [#allocation5]  }
   0xf   :  { %s27_s17 = sshll.u32 %s963_s16, 4  ;;  %s28_s17 = int_to_ptr.vmem [resolvable:$true] %s27_s17 }
  0x10   :  { %s922_s18 = scalar_lea.vmem %s28_s17, 5120  ;;  %p927_p6 = scmp.lt.s32.totalorder %s28_s17, %s28_s17 }
  0x11   :  { %p923_p5 = scmp.ne.s32.totalorder %s28_s17, %s922_s18  ;;  %p928_p7 = scmp.lt.s32.totalorder %s922_s18, %s922_s18 }
  0x13   :  { %p929_p8 = por %p928_p7, %p927_p6 }
  0x15   :  { %p930_p9 = pnand %p929_p8, %p923_p5 }
  0x17   :  { %933 = shalt.err (!%p930_p9)
}
  0x18   :  { %33 = dma.hbm_to_vmem [thread:$0]  %s993_s1, 5120, %s28_s17, [#allocation6], %s961_s12, %s961_s12, %s962_s13  }
  0x19   :  { %954 = dma.done.wait [#allocation3], 256  }
  0x1a   :  { %955 = vsyncadd [#allocation3], 4294967040 }
  0x1b   :  { %956 = dma.done.wait [#allocation6], 5120  }
  0x1c   :  { %957 = vsyncadd [#allocation6], 4294962176  ;;  %v858_v0 = vld [vmem:[#allocation5 + $0x8] sm:$0xff]   ;;  %v859_v1 = vld [vmem:[#allocation5] sm:$0xff]   ;;  %vm71_vm0 = vcmask 261120   ;;  %vm607_vm1 = vcmask 64512  }
  0x1d   :  { %758 = vmatprep.subr.bf16.mxu0 %v858_v0  ;;  %v860_v2 = vld [vmem:[#allocation2] sm:$0xff]   ;;  %v862_v3 = vld [vmem:[#allocation5 + $0x78] sm:$0xff]   ;;  %v864_v6 = vld [vmem:[#allocation5 + $0x68] sm:$0xff]   ;;  %s965_s21 = smov [#allocation7]  }
  0x1e   :  { %759 = vmatpush3.bf16.msra.mxu0 %v858_v0  ;;  %762 = vmatprep.mubr.msk.bf16.mxu0 %vm71_vm0, %v860_v2  ;;  %v863_v4 = vld [vmem:[#allocation5 + $0x70] sm:$0xff]   ;;  %v861_v5 = vld [vmem:[#allocation2 + $0x8] sm:$0xff]   ;;  %v865_v7 = vld [vmem:[#allocation5 + $0x60] sm:$0xff]   ;;  %s663_s22 = sshll.u32 %s965_s21, 4  ;;  %s664_s22 = int_to_ptr.vmem [resolvable:$true] %s663_s22 }
  0x1f   :  { %760 = vmatprep.subr.bf16.mxu0 %v859_v1  ;;  %766 = vmatprep.subr.bf16.mxu1 %v862_v3  ;;  %v866_v8 = vld [vmem:[#allocation5 + $0x58] sm:$0xff]   ;;  %v867_v9 = vld [vmem:[#allocation5 + $0x50] sm:$0xff]   ;;  %v868_v10 = vld [vmem:[#allocation5 + $0x48] sm:$0xff]   ;;  %s934_s23 = scalar_lea.vmem %s664_s22, 512  ;;  %p939_p11 = scmp.lt.s32.totalorder %s664_s22, %s664_s22 }
  0x20   :  { %767 = vmatpush3.bf16.msra.mxu1 %v862_v3  ;;  %v869_v11 = vld [vmem:[#allocation5 + $0x40] sm:$0xff]   ;;  %v870_v12 = vld [vmem:[#allocation5 + $0xb8] sm:$0xff]   ;;  %v871_v13 = vld [vmem:[#allocation5 + $0xb0] sm:$0xff]   ;;  %p935_p10 = scmp.ne.s32.totalorder %s664_s22, %s934_s23  ;;  %p940_p12 = scmp.lt.s32.totalorder %s934_s23, %s934_s23 }
  0x21   :  { %768 = vmatprep.subr.bf16.mxu1 %v863_v4  ;;  %v872_v14 = vld [vmem:[#allocation5 + $0xa8] sm:$0xff]   ;;  %v873_v15 = vld [vmem:[#allocation5 + $0xa0] sm:$0xff]   ;;  %v874_v16 = vld [vmem:[#allocation5 + $0x98] sm:$0xff]  }
  0x22   :  { %761 = vmatpush3.bf16.msra.mxu0 %v859_v1  ;;  %v875_v27 = vld [vmem:[#allocation5 + $0x90] sm:$0xff]   ;;  %v876_v28 = vld [vmem:[#allocation5 + $0x88] sm:$0xff]   ;;  %v877_v29 = vld [vmem:[#allocation5 + $0x80] sm:$0xff]   ;;  %p941_p13 = por %p940_p12, %p939_p11 }
  0x23   :  { %786 = vmatprep.subr.bf16.mxu0 %v870_v12  ;;  %v878_v30 = vld [vmem:[#allocation5 + $0xf8] sm:$0xff]   ;;  %v879_v31 = vld [vmem:[#allocation5 + $0xf0] sm:$0xff]   ;;  %v880_v32 = vld [vmem:[#allocation5 + $0xe8] sm:$0xff]  }
  0x24   :  { %769 = vmatpush3.bf16.msra.mxu1 %v863_v4  ;;  %v881_v33 = vld [vmem:[#allocation5 + $0xe0] sm:$0xff]   ;;  %v882_v34 = vld [vmem:[#allocation5 + $0xd8] sm:$0xff]   ;;  %v883_v45 = vld [vmem:[#allocation5 + $0xd0] sm:$0xff]   ;;  %p942_p0 = pnand %p941_p13, %p935_p10 }
  0x25   :  { %763 = vmatmul.mubr.msk.bf16.vlgmr.msra.gmra.mxu0 %vm71_vm0, %v861_v5  ;;  %770 = vmatprep.subr.bf16.mxu1 %v864_v6  ;;  %v884_v46 = vld [vmem:[#allocation5 + $0xc8] sm:$0xff]   ;;  %v885_v47 = vld [vmem:[#allocation5 + $0xc0] sm:$0xff]   ;;  %v886_v48 = vld [vmem:[#allocation5 + $0x138] sm:$0xff]  }
  0x26   :  { %787 = vmatpush3.bf16.msra.mxu0 %v870_v12  ;;  %v887_v49 = vld [vmem:[#allocation5 + $0x130] sm:$0xff]   ;;  %v888_v50 = vld [vmem:[#allocation5 + $0x128] sm:$0xff]   ;;  %v889_v51 = vld [vmem:[#allocation5 + $0x120] sm:$0xff]   ;;  %v964_v12 = vmov 8  }
  0x27   :  { %788 = vmatprep.subr.bf16.mxu0 %v871_v13  ;;  %v890_v52 = vld [vmem:[#allocation5 + $0x118] sm:$0xff]   ;;  %v891_v63 = vld [vmem:[#allocation5 + $0x110] sm:$0xff]   ;;  %v892_v0 = vld [vmem:[#allocation5 + $0x108] sm:$0xff]   ;;  %857 = vset.pattern.permute.xlu1 %v964_v12 }
  0x28   :  { %771 = vmatpush3.bf16.msra.mxu1 %v864_v6  ;;  %v893_v1 = vld [vmem:[#allocation5 + $0x100] sm:$0xff]   ;;  %856 = vset.pattern.permute.xlu0 %v964_v12 }
  0x29   :  { %772 = vmatprep.subr.bf16.mxu1 %v865_v7 }
  0x2a   :  { %789 = vmatpush3.bf16.msra.mxu0 %v871_v13 }
  0x2b   :  { %790 = vmatprep.subr.bf16.mxu0 %v872_v14 }
  0x2c   :  { %773 = vmatpush3.bf16.msra.mxu1 %v865_v7 }
  0x2d   :  { %774 = vmatprep.subr.bf16.mxu1 %v866_v8 }
  0x2e   :  { %791 = vmatpush3.bf16.msra.mxu0 %v872_v14 }
  0x2f   :  { %792 = vmatprep.subr.bf16.mxu0 %v873_v15 }
  0x30   :  { %775 = vmatpush3.bf16.msra.mxu1 %v866_v8 }
  0x31   :  { %776 = vmatprep.subr.bf16.mxu1 %v867_v9 }
  0x32   :  { %793 = vmatpush3.bf16.msra.mxu0 %v873_v15 }
  0x33   :  { %794 = vmatprep.subr.bf16.mxu0 %v874_v16 }
  0x34   :  { %777 = vmatpush3.bf16.msra.mxu1 %v867_v9 }
  0x35   :  { %778 = vmatprep.subr.bf16.mxu1 %v868_v10 }
  0x36   :  { %795 = vmatpush3.bf16.msra.mxu0 %v874_v16 }
  0x37   :  { %796 = vmatprep.subr.bf16.mxu0 %v875_v27 }
  0x38   :  { %779 = vmatpush3.bf16.msra.mxu1 %v868_v10 }
  0x39   :  { %780 = vmatprep.subr.bf16.mxu1 %v869_v11 }
  0x3a   :  { %797 = vmatpush3.bf16.msra.mxu0 %v875_v27 }
  0x3b   :  { %798 = vmatprep.subr.bf16.mxu0 %v876_v28 }
  0x3c   :  { %781 = vmatpush3.bf16.msra.mxu1 %v869_v11 }
  0x3d   :  { %806 = vmatprep.subr.bf16.mxu1 %v878_v30 }
  0x3e   :  { %799 = vmatpush3.bf16.msra.mxu0 %v876_v28 }
  0x3f   :  { %800 = vmatprep.subr.bf16.mxu0 %v877_v29 }
  0x42   :  { %801 = vmatpush3.bf16.msra.mxu0 %v877_v29 }
  0x43   :  { %826 = vmatprep.subr.bf16.mxu0 %v886_v48 }
  0xe5   :  { %v764_v17 = vpop.f32.mrf.mxu0 }
  0xe6   :  { %v129_v24 = vmax.f32 %v764_v17, 0.0 }
  0xe7   :  { %v112_v18 = vpop.f32.mrf.mxu0 }
  0xe8   :  { %v127_v22 = vmax.f32 %v112_v18, 0.0 }
  0xe9   :  { %v765_v19 = vpop.f32.mrf.mxu0 }
  0xea   :  { %v130_v20 = vmax.f32 %v765_v19, 0.0 }
  0xeb   :  { %v115_v21 = vpop.f32.mrf.mxu0 }
  0xec   :  { %v128_v23 = vmax.f32 %v115_v21, 0.0  ;;  %v132_v26 = vpack.c.bf16 %v130_v20, %v129_v24 }
  0xee   :  { %v131_v25 = vpack.c.bf16 %v128_v23, %v127_v22 }
  0xf0   :  { %782 = vmatprep.mubr.bf16.mxu1 %v131_v25 }
  0xf1   :  { %783 = vmatmul.mubr.bf16.vlgmr.msra.gmra.mxu1 %v132_v26 }
  0xf2   :  { %807 = vmatpush3.bf16.msra.mxu1 %v878_v30 }
  0xf3   :  { %808 = vmatprep.subr.bf16.mxu1 %v879_v31 }
  0xf6   :  { %809 = vmatpush3.bf16.msra.mxu1 %v879_v31 }
  0xf7   :  { %810 = vmatprep.subr.bf16.mxu1 %v880_v32 }
  0xfa   :  { %811 = vmatpush3.bf16.msra.mxu1 %v880_v32 }
  0xfb   :  { %812 = vmatprep.subr.bf16.mxu1 %v881_v33 }
  0xfe   :  { %813 = vmatpush3.bf16.msra.mxu1 %v881_v33 }
  0xff   :  { %814 = vmatprep.subr.bf16.mxu1 %v882_v34 }
 0x102   :  { %815 = vmatpush3.bf16.msra.mxu1 %v882_v34 }
 0x103   :  { %816 = vmatprep.subr.bf16.mxu1 %v883_v45 }
 0x106   :  { %817 = vmatpush3.bf16.msra.mxu1 %v883_v45 }
 0x107   :  { %818 = vmatprep.subr.bf16.mxu1 %v884_v46 }
 0x10a   :  { %819 = vmatpush3.bf16.msra.mxu1 %v884_v46 }
 0x10b   :  { %820 = vmatprep.subr.bf16.mxu1 %v885_v47 }
 0x10e   :  { %821 = vmatpush3.bf16.msra.mxu1 %v885_v47 }
 0x1b1   :  { %v784_v35 = vpop.f32.mrf.mxu1 }
 0x1b2   :  { %v249_v42 = vmax.f32 %v784_v35, 0.0 }
 0x1b3   :  { %v232_v36 = vpop.f32.mrf.mxu1 }
 0x1b4   :  { %v247_v40 = vmax.f32 %v232_v36, 0.0 }
 0x1b5   :  { %v785_v37 = vpop.f32.mrf.mxu1 }
 0x1b6   :  { %v250_v38 = vmax.f32 %v785_v37, 0.0 }
 0x1b7   :  { %v235_v39 = vpop.f32.mrf.mxu1 }
 0x1b8   :  { %v248_v41 = vmax.f32 %v235_v39, 0.0  ;;  %v252_v44 = vpack.c.bf16 %v250_v38, %v249_v42 }
 0x1ba   :  { %v251_v43 = vpack.c.bf16 %v248_v41, %v247_v40 }
 0x1bc   :  { %802 = vmatprep.mubr.bf16.mxu0 %v251_v43 }
 0x1bd   :  { %803 = vmatmul.mubr.bf16.vlgmr.msra.gmra.mxu0 %v252_v44 }
 0x1be   :  { %827 = vmatpush3.bf16.msra.mxu0 %v886_v48 }
 0x1bf   :  { %828 = vmatprep.subr.bf16.mxu0 %v887_v49 }
 0x1c2   :  { %829 = vmatpush3.bf16.msra.mxu0 %v887_v49 }
 0x1c3   :  { %830 = vmatprep.subr.bf16.mxu0 %v888_v50 }
 0x1c6   :  { %831 = vmatpush3.bf16.msra.mxu0 %v888_v50 }
 0x1c7   :  { %832 = vmatprep.subr.bf16.mxu0 %v889_v51 }
 0x1ca   :  { %833 = vmatpush3.bf16.msra.mxu0 %v889_v51 }
 0x1cb   :  { %834 = vmatprep.subr.bf16.mxu0 %v890_v52 }
 0x1ce   :  { %835 = vmatpush3.bf16.msra.mxu0 %v890_v52 }
 0x1cf   :  { %836 = vmatprep.subr.bf16.mxu0 %v891_v63 }
 0x1d2   :  { %837 = vmatpush3.bf16.msra.mxu0 %v891_v63 }
 0x1d3   :  { %838 = vmatprep.subr.bf16.mxu0 %v892_v0 }
 0x1d6   :  { %839 = vmatpush3.bf16.msra.mxu0 %v892_v0 }
 0x1d7   :  { %840 = vmatprep.subr.bf16.mxu0 %v893_v1 }
 0x1da   :  { %841 = vmatpush3.bf16.msra.mxu0 %v893_v1 }
 0x27d   :  { %v804_v53 = vpop.f32.mrf.mxu0 }
 0x27e   :  { %v369_v60 = vmax.f32 %v804_v53, 0.0 }
 0x27f   :  { %v352_v54 = vpop.f32.mrf.mxu0 }
 0x280   :  { %v367_v58 = vmax.f32 %v352_v54, 0.0 }
 0x281   :  { %v805_v55 = vpop.f32.mrf.mxu0 }
 0x282   :  { %v370_v56 = vmax.f32 %v805_v55, 0.0 }
 0x283   :  { %v355_v57 = vpop.f32.mrf.mxu0 }
 0x284   :  { %v368_v59 = vmax.f32 %v355_v57, 0.0  ;;  %v372_v62 = vpack.c.bf16 %v370_v56, %v369_v60 }
 0x286   :  { %v371_v61 = vpack.c.bf16 %v368_v59, %v367_v58 }
 0x288   :  { %822 = vmatprep.mubr.bf16.mxu1 %v371_v61 }
 0x289   :  { %823 = vmatmul.mubr.bf16.vlgmr.msra.gmra.mxu1 %v372_v62 }
 0x349   :  { %v824_v2 = vpop.f32.mrf.mxu1 }
 0x34a   :  { %v489_v9 = vmax.f32 %v824_v2, 0.0 }
 0x34b   :  { %v472_v3 = vpop.f32.mrf.mxu1 }
 0x34c   :  { %v487_v7 = vmax.f32 %v472_v3, 0.0 }
 0x34d   :  { %v825_v4 = vpop.f32.mrf.mxu1 }
 0x34e   :  { %v490_v5 = vmax.f32 %v825_v4, 0.0 }
 0x34f   :  { %v475_v6 = vpop.f32.mrf.mxu1 }
 0x350   :  { %v488_v8 = vmax.f32 %v475_v6, 0.0  ;;  %v492_v11 = vpack.c.bf16 %v490_v5, %v489_v9 }
 0x352   :  { %v491_v10 = vpack.c.bf16 %v488_v8, %v487_v7 }
 0x354   :  { %842 = vmatprep.mubr.bf16.mxu0 %v491_v10 }
 0x355   :  { %843 = vmatmul.mubr.bf16.vlgmr.msra.gmra.mxu0 %v492_v11 }
 0x415   :  { %v844_v13 = vpop.f32.mrf.mxu0 }
 0x416   :  { %v611_v20 = vsel %vm607_vm1, %v844_v13, 0.0 }
 0x417   :  { %v592_v14 = vpop.f32.mrf.mxu0 }
 0x418   :  { %v608_v17 = vsel %vm607_vm1, %v592_v14, 0.0 }
 0x419   :  { %v845_v15 = vpop.f32.mrf.mxu0 }
 0x41a   :  { %v613_v22 = vsel %vm607_vm1, %v845_v15, 0.0 }
 0x41b   :  { %v595_v16 = vpop.f32.mrf.mxu0 }
 0x41c   :  { %v609_v18 = vsel %vm607_vm1, %v595_v16, 0.0  ;;  %637 = vperm.xlu1 %857, %v595_v16  }
 0x41d   :  { %v610_v19 = vadd.f32 %v609_v18, %v608_v17 }
 0x41f   :  { %v612_v21 = vadd.f32 %v611_v20, %v610_v19 }
 0x420   :  { %642 = vperm.xlu1 %857, %v844_v13  }
 0x421   :  { %v614_v23 = vadd.f32 %v613_v22, %v612_v21 }
 0x423   :  { %615 = vadd.xlane.f32.xlu0 %v614_v23 }
 0x424   :  { %647 = vperm.xlu1 %857, %v845_v15  }
 0x439   :  { %632 = vperm.xlu0 %856, %v592_v14  }
 0x497   :  { %v638_v31 = vpop.permute.xlu1 %637 }
 0x49b   :  { %v643_v32 = vpop.permute.xlu1 %642 }
 0x49f   :  { %v648_v38 = vpop.permute.xlu1 %647 }
 0x4ac   :  { %v616_v24 = vpop.xlane.xlu0 %615 }
 0x4ad   :  { %v617_v25 = vrot.slane %v616_v24, 4 }
 0x4af   :  { %v618_v26 = vadd.f32 %v617_v25, %v616_v24 }
 0x4b1   :  { %v619_v27 = vrot.slane %v618_v26, 2 }
 0x4b3   :  { %v620_v28 = vadd.f32 %v619_v27, %v618_v26 }
 0x4b4   :  { %v633_v39 = vpop.permute.xlu0 %632 }
 0x4b5   :  { %v621_v29 = vrot.slane %v620_v28, 1 }
 0x4b7   :  { %v622_v30 = vadd.f32 %v621_v29, %v620_v28 }
 0x4b9   :  { %846 = vpush %v622_v30 }
 0x4ea   :  { %s847_s0 = spop %846 }
 0x4eb   :  { %s624_s1 = smul.f32 0.00390625, %s847_s0 }
 0x4ed   :  { %v625_v33 = vstv %s624_s1 }
 0x4ee   :  { %v626_v34 = vsub.f32 %v592_v14, %v625_v33  ;;  %v627_v35 = vsub.f32 %v595_v16, %v625_v33  ;;  %v628_v36 = vsub.f32 %v844_v13, %v625_v33  ;;  %v629_v37 = vsub.f32 %v845_v15, %v625_v33 }
 0x4f0   :  { %v650_v40 = vadd.f32 %v633_v39, %v626_v34  ;;  %v651_v41 = vadd.f32 %v638_v31, %v627_v35  ;;  %v652_v42 = vadd.f32 %v643_v32, %v628_v36  ;;  %v653_v43 = vadd.f32 %v648_v38, %v629_v37 }
 0x4f2   :  { %654 = vst [vmem:[#allocation7] sm:$0xff] %v650_v40  ;;  %655 = vst [vmem:[#allocation7 + $0x8] sm:$0xff] %v651_v41 }
 0x4f3   :  { %656 = vst [vmem:[#allocation7 + $0x10] sm:$0xff] %v652_v42  ;;  %657 = vst [vmem:[#allocation7 + $0x18] sm:$0xff] %v653_v43 }
 0x4f4   :  { %945 = shalt.err (!%p942_p0)
}
 0x4f5   :  { %s966_s24 = smov 128   ;;  %s967_s25 = smov 8  }
 0x4f6   :  { %669 = dma.vmem_to_hbm [thread:$0]  %s664_s22, 512, %s994_s2, [#allocation4], %s966_s24, %s966_s24, %s967_s25  }
 0x4f7   :  { %958 = dma.done.wait [#allocation4], 512  }
 0x4f8   :  { %959 = vsyncadd [#allocation4], 4294966784 }
 0x4f9   :  { %673 = vsyncpa [#allocation3], 1 }
 0x4fa   :  { %674 = vsyncpa [#allocation6], 1 }
 0x4fb   :  { %675 = vsyncpa [#allocation4], 1 }

</bundles_post_ra>
